<compile_context>
chip_gen: v6e
topology: v6e:2x2x1
jax: 0.10.0
libtpu: 0.0.40
codegen_flags: <defaults>
</compile_context>

<pallas_src>
import functools
import math

import jax
import jax.numpy as jnp
from jax.experimental import pallas as pl
from jax.experimental.pallas import tpu as pltpu


def _round_up(x, m):
    return ((x + m - 1) // m) * m


@functools.lru_cache(maxsize=1)
def _vmem_limit_bytes():
    """~75% of physical VMEM (48 MiB on v7x, 96 MiB on v5e/v6e), safe fallback."""
    cap = 64 * 2 ** 20                      # conservative default (v7x)
    try:
        info = pltpu.get_tpu_info()
        cap = int(getattr(info, "vmem_capacity_bytes", cap)) or cap
    except Exception:
        pass
    return min(cap * 3 // 4, 112 * 2 ** 20)


def _pick_feature_pad(d):
    # Lane-dense multiple of 128: always (8,128)-compliant, no wasted MXU work
    # on awkward dims (important on v5e's 128-wide MXU).
    # TODO(synk): round up to 256 on v6e/v7x once a reliable chip-version query
    # is wired in; the win is small vs. up to 50% padding waste on v5e.
    return _round_up(max(d, 1), 128)


def _pick_tm_goal(M8, cap=1024):
    """Desired M tile: >=2 whole grid steps when possible (v7x megacore), capped."""
    if M8 < 16:
        return M8
    return min(_round_up(-(-M8 // 2), 8), cap)


def _pick_tile(dp, cap):
    """Largest multiple of 128 <= cap that divides dp (dp is a multiple of 128)."""
    t = max(min(dp, cap) // 128 * 128, 128)
    while dp % t != 0:
        t -= 128
    return t


# ----------------------------------------------------------------------------
# Path 1 (small weight stacks): whole stack resident in VMEM, grid over M only.
# ----------------------------------------------------------------------------
def _resident_kernel(x_ref, w_ref, b_ref, o_ref, *, num_blocks):
    # x_ref: (tm, Kp) bf16 ; w_ref: (nb, Kp, Np) bf16 ; b_ref: (nb, 1, Np) f32
    h = x_ref[...]
    for blk in range(num_blocks):                   # static unroll (small nb only)
        acc = jnp.dot(h, w_ref[blk], preferred_element_type=jnp.float32)
        act = jnp.maximum(acc + b_ref[blk], 0.0)    # f32 epilogue
        h = act.astype(jnp.bfloat16) if blk + 1 < num_blocks else act
    o_ref[...] = h.astype(o_ref.dtype)


def _mamba_resident_call(x_bf, w_stack, b_stack, tm, out_dtype, vmem_limit):
    M_pad, Kp = x_bf.shape
    nb, _, Np = w_stack.shape
    kernel = functools.partial(_resident_kernel, num_blocks=nb)
    return pl.pallas_call(
        kernel,
        out_shape=jax.ShapeDtypeStruct((M_pad, Np), out_dtype),
        grid_spec=pltpu.PrefetchScalarGridSpec(
            num_scalar_prefetch=0,
            grid=(M_pad // tm,),
            in_specs=[
                # x tile: pipelined along the parallel M axis.
                # TODO(synk): deepen to 3 buffers on v5e if the DMA stream
                # profiles exposed (cheap there, wasted VMEM on v7x).
                pl.BlockSpec((tm, Kp), lambda i: (i, 0)),
                # Constant block index -> DMA'd once and kept resident.
                # TODO(synk): single-buffer via pipeline_mode=pl.Buffered(1)
                # once per-operand buffer counts are honoured by the top-level
                # TPU pipeliner; the caller budgets these at 2x meanwhile.
                pl.BlockSpec((nb, Kp, Np), lambda i: (0, 0, 0)),
                pl.BlockSpec((nb, 1, Np), lambda i: (0, 0, 0)),
            ],
            out_specs=pl.BlockSpec((tm, Np), lambda i: (i, 0)),
        ),
        compiler_params=pltpu.CompilerParams(
            dimension_semantics=("parallel",),
            vmem_limit_bytes=vmem_limit,
        ),
    )(x_bf, w_stack, b_stack)


# ----------------------------------------------------------------------------
# Path 2 (primary): grid = (M_tiles, num_blocks), block axis last + "arbitrary".
# Weight block b+1's DMA overlaps block b's matmul; the activation is carried
# in a persistent VMEM scratch so intermediates never touch HBM, and at most
# two weight blocks live in VMEM at a time.
# ----------------------------------------------------------------------------
def _chain_kernel(x_ref, w_ref, b_ref, o_ref, h_ref, *, num_blocks):
    blk = pl.program_id(1)

    @pl.when(blk == 0)
    def _():
        h_ref[...] = x_ref[...]                     # load this M tile's input

    acc = jnp.dot(h_ref[...], w_ref[0], preferred_element_type=jnp.float32)
    act = jnp.maximum(acc + b_ref[0], 0.0)          # f32 epilogue

    @pl.when(blk == num_blocks - 1)
    def _():
        o_ref[...] = act.astype(o_ref.dtype)

    if num_blocks > 1:                              # static guard (Kp == Np here)
        @pl.when(blk < num_blocks - 1)
        def _():
            h_ref[...] = act.astype(h_ref.dtype)


def _mamba_chain_call(x_bf, w_stack, b_stack, tm, out_dtype, vmem_limit):
    M_pad, Kp = x_bf.shape
    nb, _, Np = w_stack.shape
    kernel = functools.partial(_chain_kernel, num_blocks=nb)
    return pl.pallas_call(
        kernel,
        out_shape=jax.ShapeDtypeStruct((M_pad, Np), out_dtype),
        grid_spec=pltpu.PrefetchScalarGridSpec(
            num_scalar_prefetch=0,
            grid=(M_pad // tm, nb),                 # block-chain axis last
            in_specs=[
                # Constant block index across the b axis -> fetched once per i.
                pl.BlockSpec((tm, Kp), lambda i, b: (i, 0)),
                # One weight/bias block per chain step, streamed (double-buffered).
                pl.BlockSpec((1, Kp, Np), lambda i, b: (b, 0, 0)),
                pl.BlockSpec((1, 1, Np), lambda i, b: (b, 0, 0)),
            ],
            out_specs=pl.BlockSpec((tm, Np), lambda i, b: (i, 0)),
            scratch_shapes=[pltpu.VMEM((tm, Kp), jnp.bfloat16)],   # carried h
        ),
        compiler_params=pltpu.CompilerParams(
            dimension_semantics=("parallel", "arbitrary"),
            vmem_limit_bytes=vmem_limit,
        ),
    )(x_bf, w_stack, b_stack)


# ----------------------------------------------------------------------------
# Path 3 (fallback): one Linear+ReLU, M/N/K tiled, f32 VMEM accumulator,
# epilogue fuses bias + ReLU + downcast (bf16 for intermediate blocks).
# ----------------------------------------------------------------------------
def _linear_relu_kernel(x_ref, w_ref, b_ref, o_ref, acc_ref):
    k = pl.program_id(2)

    @pl.when(k == 0)
    def _():
        acc_ref[...] = jnp.zeros_like(acc_ref)

    acc_ref[...] += jnp.dot(x_ref[...], w_ref[...],
                            preferred_element_type=jnp.float32)

    @pl.when(k == pl.num_programs(2) - 1)
    def _():
        o_ref[...] = jnp.maximum(acc_ref[...] + b_ref[...], 0.0).astype(o_ref.dtype)


def _linear_relu_tiled(x_bf, w_bf, b_f32, tm, tn, tk, out_dtype, vmem_limit):
    M_pad, Kp = x_bf.shape
    _, Np = w_bf.shape
    b2d = b_f32.reshape(1, Np)
    return pl.pallas_call(
        _linear_relu_kernel,
        out_shape=jax.ShapeDtypeStruct((M_pad, Np), out_dtype),
        grid_spec=pltpu.PrefetchScalarGridSpec(
            num_scalar_prefetch=0,
            grid=(M_pad // tm, Np // tn, Kp // tk),   # reduction axis last
            in_specs=[
                pl.BlockSpec((tm, tk), lambda i, j, k: (i, k)),
                pl.BlockSpec((tk, tn), lambda i, j, k: (k, j)),
                pl.BlockSpec((1, tn), lambda i, j, k: (0, j)),
            ],
            out_specs=pl.BlockSpec((tm, tn), lambda i, j, k: (i, j)),
            scratch_shapes=[pltpu.VMEM((tm, tn), jnp.float32)],
        ),
        compiler_params=pltpu.CompilerParams(
            dimension_semantics=("parallel", "parallel", "arbitrary"),
            vmem_limit_bytes=vmem_limit,
        ),
    )(x_bf, w_bf, b2d)


# ----------------------------------------------------------------------------
# MambaLayer forward: padding / hardware-aware path selection in plain JAX.
# ----------------------------------------------------------------------------
@functools.partial(jax.jit, static_argnames=("force_path",))
def mamba_layer_forward(x, weights, biases, *, force_path=None):
    """x: (batch, seq, input_dim) -> (batch, seq, hidden_dim), dtype preserved.

    weights[i]: (in_dim_i, hidden_dim) f32  (transpose of torch nn.Linear.weight)
    biases[i]:  (hidden_dim,) f32
    force_path: None (auto) | "resident" | "chain" | "tiled"   (testing hook)
    """
    nb = len(weights)
    batch, seq, in_dim = x.shape
    hidden = weights[-1].shape[1]
    M = batch * seq
    out_dtype = x.dtype
    out_isz = jnp.dtype(out_dtype).itemsize

    # PyTorch chaining silently requires hidden_dim == input_dim for blocks > 0.
    for i, w in enumerate(weights):
        expected_in = in_dim if i == 0 else hidden
        assert w.shape == (expected_in, hidden), (
            "MambaLayer chaining requires hidden_dim == input_dim for num_blocks > 1")

    Kp = _pick_feature_pad(in_dim)
    Np = _pick_feature_pad(hidden)
    if nb > 1:
        Kp = Np = max(Kp, Np)            # common padded width along the chain

    vmem_limit = _vmem_limit_bytes()
    budget = vmem_limit * 3 // 4         # headroom for Mosaic internal scratch

    M8 = _round_up(max(M, 8), 8)
    tm_goal = _pick_tm_goal(M8)

    def clamp_tm(row_bytes, fixed_bytes):
        avail = budget - fixed_bytes
        if avail <= 0:
            return 0
        return min(tm_goal, max(avail // row_bytes, 0) // 8 * 8)

    # ---- path selection (static Python, all estimates are VMEM bytes) -------
    path, tm = force_path, 0
    if path in (None, "resident"):
        # Whole stack resident; counted 2x: the default pipeliner still
        # double-buffers constant-index blocks (see TODO in _mamba_resident_call).
        fixed = 2 * nb * Kp * Np * 2 + 2 * nb * Np * 4
        rowb = 2 * Kp * 2 + 2 * Np * out_isz + (nb + 1) * Np * 4  # + unrolled f32
        if path == "resident" or (fixed <= budget // 4 and nb <= 8):
            tm = clamp_tm(rowb, fixed)
            if tm >= 8:
                path = "resident"
            elif path == "resident":
                raise ValueError("resident path does not fit in VMEM")
            else:
                path = None
    if path in (None, "chain"):
        fixed = 2 * Kp * Np * 2 + 2 * Np * 4          # two weight blocks live
        rowb = 3 * Kp * 2 + 2 * Np * out_isz + Np * 4  # x(2) + h + out(2) + f32 act
        tm = clamp_tm(rowb, fixed)
        if tm >= 8:
            path = "chain"
        elif path == "chain":
            raise ValueError("chain path does not fit in VMEM")
        else:
            path = None
    if path is None:
        path = "tiled"
    if path == "tiled":
        tm = _pick_tm_goal(M8, cap=512)

    M_pad = _round_up(M8, tm)

    # ---- padded operands, built directly in their kernel dtypes -------------
    # TODO(synk): hoist the weight padding/cast out of the per-call jit when the
    # weights are static across calls (precompute once at init).
    x2d = x.reshape(M, in_dim)
    x_bf = jnp.zeros((M_pad, Kp), jnp.bfloat16).at[:M, :in_dim].set(
        x2d.astype(jnp.bfloat16))

    w_pads, b_pads = [], []
    for w, b in zip(weights, biases):
        wp = jnp.zeros((Kp, Np), jnp.bfloat16).at[: w.shape[0], : w.shape[1]].set(
            w.astype(jnp.bfloat16))
        bp = jnp.zeros((Np,), jnp.float32).at[: b.shape[0]].set(b.astype(jnp.float32))
        w_pads.append(wp)
        b_pads.append(bp)

    if path == "resident":
        w_stack = jnp.stack(w_pads)                  # (nb, Kp, Np) bf16
        b_stack = jnp.stack(b_pads)[:, None, :]      # (nb, 1, Np)  f32
        out = _mamba_resident_call(x_bf, w_stack, b_stack, tm, out_dtype, vmem_limit)
    elif path == "chain":
        w_stack = jnp.stack(w_pads)
        b_stack = jnp.stack(b_pads)[:, None, :]
        out = _mamba_chain_call(x_bf, w_stack, b_stack, tm, out_dtype, vmem_limit)
    else:
        tn = _pick_tile(Np, 512)
        tk = _pick_tile(Kp, 1024)
        h = x_bf
        for idx, (wp, bp) in enumerate(zip(w_pads, b_pads)):
            blk_dtype = out_dtype if idx == nb - 1 else jnp.bfloat16
            h = _linear_relu_tiled(h, wp, bp, tm, tn, tk, blk_dtype, vmem_limit)
        out = h

    return out[:M, :hidden].reshape(batch, seq, hidden)


# ----------------------------------------------------------------------------
# Params init + pure-JAX reference
# ----------------------------------------------------------------------------
def init_mamba_layer_params(key, input_dim, hidden_dim, num_blocks):
    """nn.Linear-style init (uniform +-1/sqrt(fan_in)); weights stored (K, N)."""
    ws, bs = [], []
    in_dim = input_dim
    for _ in range(num_blocks):
        key, kw, kb = jax.random.split(key, 3)
        bound = 1.0 / math.sqrt(in_dim)
        ws.append(jax.random.uniform(kw, (in_dim, hidden_dim), jnp.float32, -bound, bound))
        bs.append(jax.random.uniform(kb, (hidden_dim,), jnp.float32, -bound, bound))
        in_dim = hidden_dim
    return tuple(ws), tuple(bs)


def mamba_layer_ref(x, weights, biases):
    h = x
    for w, b in zip(weights, biases):
        h = jnp.maximum(h @ w + b, 0.0)
    return h


if __name__ == "__main__":
    batch, seq = 2, 8
    input_dim = hidden_dim = 32       # equal so num_blocks > 1 chains like PyTorch
    num_blocks = 2

    key = jax.random.PRNGKey(0)
    key, kx = jax.random.split(key)
    x = jax.random.normal(kx, (batch, seq, input_dim), jnp.float32)
    ws, bs = init_mamba_layer_params(key, input_dim, hidden_dim, num_blocks)

    ref = mamba_layer_ref(x, ws, bs)

    outs = {}
    # Auto path (resident at these shapes), then force the other two code paths.
    outs["auto"] = jax.block_until_ready(mamba_layer_forward(x, ws, bs))
    outs["chain"] = jax.block_until_ready(
        mamba_layer_forward(x, ws, bs, force_path="chain"))
    outs["tiled"] = jax.block_until_ready(
        mamba_layer_forward(x, ws, bs, force_path="tiled"))

    for name, out in outs.items():
        assert out.shape == (batch, seq, hidden_dim), (name, out.shape)
        err = float(jnp.max(jnp.abs(out - ref)))
        # bf16 MXU operands -> bf16-level tolerance vs the f32 reference.
        assert jnp.allclose(out, ref, atol=3e-2, rtol=3e-2), (name, err)

    print("KERNEL_OK")
</pallas_src>

<mosaic_0001>
module attributes {stable_mosaic.version = 11 : i64} {
  func.func @_resident_kernel(%arg0: i32, %arg1: memref<8x128xbf16, #tpu.memory_space<vmem>>, %arg2: memref<2x128x128xbf16, #tpu.memory_space<vmem>>, %arg3: memref<2x1x128xf32, #tpu.memory_space<vmem>>, %arg4: memref<8x128xf32, #tpu.memory_space<vmem>>) attributes {dimension_semantics = [#tpu.dimension_semantics<parallel>], iteration_bounds = array<i64: 2>, scalar_prefetch = 0 : i64, scratch_operands = 0 : i64, tpu.core_type = #tpu.core_type<tc>, window_params = [{transform_indices = @transform_0, window_bounds = array<i64: 8, 128>}, {pipeline_mode = #tpu.pipeline_mode<synchronous>, transform_indices = @transform_1, window_bounds = array<i64: 2, 128, 128>}, {pipeline_mode = #tpu.pipeline_mode<synchronous>, transform_indices = @transform_2, window_bounds = array<i64: 2, 1, 128>}, {transform_indices = @transform_3, window_bounds = array<i64: 8, 128>}]} {
    %c0 = arith.constant 0 : index
    %c0_0 = arith.constant 0 : index
    %0 = vector.load %arg1[%c0, %c0_0] : memref<8x128xbf16, #tpu.memory_space<vmem>>, vector<8x128xbf16>
    %c0_1 = arith.constant 0 : index
    %c0_2 = arith.constant 0 : index
    %c0_3 = arith.constant 0 : index
    %1 = vector.load %arg2[%c0_1, %c0_2, %c0_3] : memref<2x128x128xbf16, #tpu.memory_space<vmem>>, vector<1x128x128xbf16>
    %2 = vector.shape_cast %1 : vector<1x128x128xbf16> to vector<128x128xbf16>
    %cst = arith.constant dense<0.000000e+00> : vector<8x128xf32>
    %3 = tpu.matmul %0, %2, %cst {dimension_numbers = #tpu.dot_dimension_numbers<[1], [0], [0], [1], [0, 0, 1, 1], [], []>} : vector<8x128xbf16>, vector<128x128xbf16>, vector<8x128xf32> -> vector<8x128xf32>
    %c0_4 = arith.constant 0 : index
    %c0_5 = arith.constant 0 : index
    %c0_6 = arith.constant 0 : index
    %4 = vector.load %arg3[%c0_4, %c0_5, %c0_6] : memref<2x1x128xf32, #tpu.memory_space<vmem>>, vector<1x1x128xf32>
    %5 = vector.shape_cast %4 : vector<1x1x128xf32> to vector<1x128xf32>
    %6 = vector.broadcast %5 : vector<1x128xf32> to vector<8x128xf32>
    %7 = arith.addf %3, %6 : vector<8x128xf32>
    %cst_7 = arith.constant 0.000000e+00 : f32
    %8 = vector.broadcast %cst_7 : f32 to vector<8x128xf32>
    %9 = arith.maximumf %7, %8 : vector<8x128xf32>
    %10 = arith.truncf %9 : vector<8x128xf32> to vector<8x128xbf16>
    %c1 = arith.constant 1 : index
    %c0_8 = arith.constant 0 : index
    %c0_9 = arith.constant 0 : index
    %11 = vector.load %arg2[%c1, %c0_8, %c0_9] : memref<2x128x128xbf16, #tpu.memory_space<vmem>>, vector<1x128x128xbf16>
    %12 = vector.shape_cast %11 : vector<1x128x128xbf16> to vector<128x128xbf16>
    %cst_10 = arith.constant dense<0.000000e+00> : vector<8x128xf32>
    %13 = tpu.matmul %10, %12, %cst_10 {dimension_numbers = #tpu.dot_dimension_numbers<[1], [0], [0], [1], [0, 0, 1, 1], [], []>} : vector<8x128xbf16>, vector<128x128xbf16>, vector<8x128xf32> -> vector<8x128xf32>
    %c1_11 = arith.constant 1 : index
    %c0_12 = arith.constant 0 : index
    %c0_13 = arith.constant 0 : index
    %14 = vector.load %arg3[%c1_11, %c0_12, %c0_13] : memref<2x1x128xf32, #tpu.memory_space<vmem>>, vector<1x1x128xf32>
    %15 = vector.shape_cast %14 : vector<1x1x128xf32> to vector<1x128xf32>
    %16 = vector.broadcast %15 : vector<1x128xf32> to vector<8x128xf32>
    %17 = arith.addf %13, %16 : vector<8x128xf32>
    %cst_14 = arith.constant 0.000000e+00 : f32
    %18 = vector.broadcast %cst_14 : f32 to vector<8x128xf32>
    %19 = arith.maximumf %17, %18 : vector<8x128xf32>
    %c0_15 = arith.constant 0 : index
    %c0_16 = arith.constant 0 : index
    %20 = vector.load %arg4[%c0_15, %c0_16] : memref<8x128xf32, #tpu.memory_space<vmem>>, vector<8x128xf32>
    tpu.vector_store %arg4[%c0_15, %c0_16], %19 {strides = array<i32>} : memref<8x128xf32, #tpu.memory_space<vmem>>, vector<8x128xf32>,
    return
  }
  func.func @transform_0(%arg0: i32) -> (i32, i32) {
    %c0_i32 = arith.constant 0 : i32
    %c0_i32_0 = arith.constant 0 : i32
    return %arg0, %c0_i32 : i32, i32
  }
  func.func @transform_1(%arg0: i32) -> (i32, i32, i32) {
    %c0_i32 = arith.constant 0 : i32
    %c0_i32_0 = arith.constant 0 : i32
    %c0_i32_1 = arith.constant 0 : i32
    %c0_i32_2 = arith.constant 0 : i32
    return %c0_i32, %c0_i32_0, %c0_i32_1 : i32, i32, i32
  }
  func.func @transform_2(%arg0: i32) -> (i32, i32, i32) {
    %c0_i32 = arith.constant 0 : i32
    %c0_i32_0 = arith.constant 0 : i32
    %c0_i32_1 = arith.constant 0 : i32
    %c0_i32_2 = arith.constant 0 : i32
    return %c0_i32, %c0_i32_0, %c0_i32_1 : i32, i32, i32
  }
  func.func @transform_3(%arg0: i32) -> (i32, i32) {
    %c0_i32 = arith.constant 0 : i32
    %c0_i32_0 = arith.constant 0 : i32
    return %arg0, %c0_i32 : i32, i32
  }
}

</mosaic_0001>

<bundles_post_ra>
// kernel: mamba_layer_forward.1
= control target key start
LH: loop header
LB: loop body
LE: loop exit
PB: predicated region body
PF: predicated region fallthrough
CT: control target
= control target key end

     0   :  { %s607_s12 = smov 0   ;;  %s686_s0 = inlined_call_operand.vmem [shape: bf16[16,128], index: 0, kind: input, shape index: {}]   ;;  %s687_s1 = inlined_call_operand.vmem [shape: bf16[2,128,128], index: 1, kind: input, shape index: {}]   ;;  %s688_s2 = inlined_call_operand.vmem [shape: f32[2,1,128], index: 2, kind: input, shape index: {}]   ;;  %s689_s3 = inlined_call_operand.vmem [shape: f32[16,128], index: 3, kind: output, shape index: {}]  }
   0x1 LB: > { %s449_s13 = sadd.s32 4294967295, %s583_s12   ;;  %p453_p0 = scmp.ge.s32.totalorder %s583_s12, 1  ;;  %s583_s12 = sphi %s607_s12, %s13_s12  }
   0x2   : > { %p136_p1 = scmp.lt.s32.totalorder %s583_s12, 3 }
   0x4   : > { %p137_p2 = pnand %p453_p0, %p136_p1 }
   0x5   : > { %p158_p3 = scmp.lt.s32.totalorder (!%p137_p2), %s449_s13, 1 }
   0x6   : > { %140 = sbr.rel (%p137_p2) target bundleno = 442 (0x1ba), region = 32 }
   0xb   : > { %v561_v0 = vld [vmem:[%s687_s1 + $0x38] sm:$0xff]   ;;  %v585_v1 = vmov 0.0   ;;  %v562_v2 = vld [vmem:[%s687_s1 + $0x30] sm:$0xff]   ;;  %vm586_vm0 = vmmov 0   ;;  %v563_v3 = vld [vmem:[%s687_s1 + $0x28] sm:$0xff]   ;;  %s691_s13 = smov (!%p158_p3, %s449_s13), 1 }
   0xc   : > { %511 = vmatprep.subr.bf16.mxu0 %v585_v1  ;;  %531 = vmatprep.subr.bf16.mxu1 %v585_v1  ;;  %v569_v4 = vld [vmem:[%s687_s1 + $0x78] sm:$0xff]   ;;  %v564_v5 = vld [vmem:[%s687_s1 + $0x20] sm:$0xff]   ;;  %v570_v6 = vld [vmem:[%s687_s1 + $0x70] sm:$0xff]   ;;  %s454_s11 = sshll.u32 %s691_s13, 2  ;;  %s455_s29 = sshll.u32 %s691_s13, 3 }
   0xd   : > { %512 = vmatpush3.bf16.msra.mxu0 %v561_v0  ;;  %527 = vmatprep.mubr.msk.bf16.mxu0 %vm586_vm0, %v585_v1  ;;  %v565_v7 = vld [vmem:[%s687_s1 + $0x18] sm:$0xff]   ;;  %v571_v8 = vld [vmem:[%s687_s1 + $0x68] sm:$0xff]   ;;  %v566_v9 = vld [vmem:[%s687_s1 + $0x10] sm:$0xff]   ;;  %s161_s18 = scalar_lea.vmem %s686_s0, %s454_s11  ;;  %s165_s5 = scalar_lea.vmem %s689_s3, %s455_s29 }
   0xe   : > { %513 = vmatprep.subr.bf16.mxu0 %v585_v1  ;;  %547 = vmatprep.mubr.msk.bf16.mxu1 %vm586_vm0, %v585_v1  ;;  %v572_v10 = vld [vmem:[%s687_s1 + $0x60] sm:$0xff]   ;;  %v567_v11 = vld [vmem:[%s687_s1 + $0x8] sm:$0xff]   ;;  %v573_v12 = vld [vmem:[%s687_s1 + $0x58] sm:$0xff]  }
   0xf   : > { %532 = vmatpush3.bf16.msra.mxu1 %v569_v4  ;;  %v568_v13 = vld [vmem:[%s687_s1] sm:$0xff]   ;;  %v574_v14 = vld [vmem:[%s687_s1 + $0x50] sm:$0xff]   ;;  %v575_v16 = vld [vmem:[%s687_s1 + $0x48] sm:$0xff]  }
  0x10   : > { %533 = vmatprep.subr.bf16.mxu1 %v585_v1  ;;  %v167_v15 = vld [vmem:[%s161_s18] sm:$0xf] }
  0x11   : > { %514 = vmatpush3.bf16.msra.mxu0 %v562_v2  ;;  %v576_v17 = vld [vmem:[%s687_s1 + $0x40] sm:$0xff]  }
  0x12   : > { %515 = vmatprep.subr.bf16.mxu0 %v585_v1  ;;  %v456_v18 = vld [vmem:[%s688_s2] ss:$0 sm:$0xff]  ;;  %v482_v26 = vld [vmem:[%s688_s2 + $0x1] ss:$0 sm:$0xff] }
  0x13   : > { %534 = vmatpush3.bf16.msra.mxu1 %v570_v6 }
  0x14   : > { %535 = vmatprep.subr.bf16.mxu1 %v585_v1 }
  0x15   : > { %516 = vmatpush3.bf16.msra.mxu0 %v563_v3 }
  0x16   : > { %517 = vmatprep.subr.bf16.mxu0 %v585_v1 }
  0x17   : > { %536 = vmatpush3.bf16.msra.mxu1 %v571_v8 }
  0x18   : > { %537 = vmatprep.subr.bf16.mxu1 %v585_v1 }
  0x19   : > { %518 = vmatpush3.bf16.msra.mxu0 %v564_v5 }
  0x1a   : > { %519 = vmatprep.subr.bf16.mxu0 %v585_v1 }
  0x1b   : > { %538 = vmatpush3.bf16.msra.mxu1 %v572_v10 }
  0x1c   : > { %539 = vmatprep.subr.bf16.mxu1 %v585_v1 }
  0x1d   : > { %520 = vmatpush3.bf16.msra.mxu0 %v565_v7 }
  0x1e   : > { %521 = vmatprep.subr.bf16.mxu0 %v585_v1 }
  0x1f   : > { %540 = vmatpush3.bf16.msra.mxu1 %v573_v12 }
  0x20   : > { %541 = vmatprep.subr.bf16.mxu1 %v585_v1 }
  0x21   : > { %522 = vmatpush3.bf16.msra.mxu0 %v566_v9 }
  0x22   : > { %523 = vmatprep.subr.bf16.mxu0 %v585_v1 }
  0x23   : > { %542 = vmatpush3.bf16.msra.mxu1 %v574_v14 }
  0x24   : > { %543 = vmatprep.subr.bf16.mxu1 %v585_v1 }
  0x25   : > { %524 = vmatpush3.bf16.msra.mxu0 %v567_v11 }
  0x26   : > { %525 = vmatprep.subr.bf16.mxu0 %v585_v1 }
  0x27   : > { %544 = vmatpush3.bf16.msra.mxu1 %v575_v16 }
  0x28   : > { %545 = vmatprep.subr.bf16.mxu1 %v585_v1 }
  0x29   : > { %526 = vmatpush3.bf16.msra.mxu0 %v568_v13 }
  0x2b   : > { %546 = vmatpush3.bf16.msra.mxu1 %v576_v17 }
  0x2c   : > { %528 = vmatmul.mubr.bf16.vlgmr.msra.gmra.mxu0 %v167_v15 }
  0xec   : > { %v273_v19 = vpop.f32.mrf.mxu0 }
  0xed   : > { %v274_v20 = vadd.f32 %v456_v18, %v273_v19 }
  0xee   : > { %v529_v21 = vpop.f32.mrf.mxu0 }
  0xef   : > { %v279_v22 = vmax.f32 %v274_v20, 0.0 }
  0xf0   : > { %v276_v23 = vpop.f32.mrf.mxu0 }
  0xf1   : > { %v280_v24 = vpack.c.bf16 %v279_v22, %v279_v22 }
  0xf2   : > { %v530_v25 = vpop.f32.mrf.mxu0 }
  0xf3   : > { %548 = vmatmul.mubr.bf16.vlgmr.msra.gmra.mxu1 %v280_v24 }
 0x1b3   : > { %v388_v27 = vpop.f32.mrf.mxu1 }
 0x1b4   : > { %v389_v28 = vadd.f32 %v482_v26, %v388_v27 }
 0x1b5   : > { %v549_v29 = vpop.f32.mrf.mxu1 }
 0x1b6   : > { %v394_v30 = vmax.f32 %v389_v28, 0.0 }
 0x1b7   : > { %v391_v31 = vpop.f32.mrf.mxu1 }
 0x1b8   : > { %395 = vst [vmem:[%s165_s5] sm:$0xff] %v394_v30 }
 0x1b9   : > { %v550_v32 = vpop.f32.mrf.mxu1 }
 0x1ba PF: > { %s13_s12 = sadd.s32 1, %s583_s12  }
 0x1bb   : > { %p10_p4 = scmp.ge.s32.totalorder %s13_s12, 4  }
 0x1bd   :  { %12 = sbr.rel (!%p10_p4) target bundleno = 1 (0x1), region = 64 }

</bundles_post_ra>
